<compile_context>
chip_gen: v5e
topology: v5e:2x2
jax: 0.10.0
libtpu: 0.0.40
codegen_flags: <defaults>
</compile_context>

<pallas_src>
import jax
import jax.numpy as jnp
from jax.experimental import pallas as pl
from jax.experimental.pallas import tpu as pltpu


# ----------------------------------------------------------------------------
# Kernel: tiled identity copy producing the flattened (N, C) output.
# ----------------------------------------------------------------------------
def _flatten_copy_kernel(x_ref, o_ref):
    o_ref[...] = x_ref[...]


# Row / channel tile sizes.  Blocks are either a multiple of (8, 128) or the
# full array extent, so the (sublane, lane) constraint is always satisfied;
# 512 x 1024 x 4 B = 2 MiB per buffer keeps the double-buffered pipeline well
# under the default scoped-VMEM limit on every TPU generation (16 MiB v5e,
# 32 MiB v6e/v7x).
_TN = 512    # rows per grid step   (512 % 8 == 0)
_TC = 1024   # channels per grid step (1024 % 128 == 0)


def flatten_forward(x):
    """Pallas equivalent of Flatten().forward(x) for x of shape (N, C, 1, 1)."""
    N, C, H, W = x.shape
    # Same contract as the PyTorch module's assert.
    assert H == 1 and W == 1, "Flatten expects spatial dims == 1"

    # (N, C, 1, 1) -> (N, C) is metadata-only and identical to x[:, :, 0, 0];
    # feeding the kernel a 2-D operand keeps C in the lane dimension (dense
    # `vst` stores) instead of forcing a (1, 1)-trailing-tile layout.
    x2d = x.reshape(N, C)

    tn = N if N <= _TN else _TN
    tc = C if C <= _TC else _TC
    grid = (pl.cdiv(N, tn), pl.cdiv(C, tc))

    out = pl.pallas_call(
        _flatten_copy_kernel,
        out_shape=jax.ShapeDtypeStruct((N, C), x.dtype),
        grid=grid,
        in_specs=[pl.BlockSpec((tn, tc), lambda i, j: (i, j))],
        out_specs=pl.BlockSpec((tn, tc), lambda i, j: (i, j)),
        compiler_params=pltpu.CompilerParams(
            dimension_semantics=("parallel", "parallel")),
    )(x2d)
    return out


if __name__ == "__main__":
    key = jax.random.PRNGKey(0)
    # Small shape consistent with the module: the network feeds Flatten a
    # (batch, features_dim, 1, 1) tensor after AdaptiveAvgPool2d(1).
    x = jax.random.normal(key, (2, 256, 1, 1), jnp.float32)

    out = flatten_forward(x)
    out = jax.block_until_ready(out)

    ref = x[:, :, 0, 0]
    assert out.shape == (2, 256), out.shape
    assert bool(jnp.array_equal(out, ref)), "Pallas Flatten mismatch vs reference"
    print("KERNEL_OK")
</pallas_src>

<mosaic_0001>
module attributes {stable_mosaic.version = 11 : i64} {
  func.func @_flatten_copy_kernel(%arg0: i32, %arg1: i32, %arg2: memref<2x256xf32, #tpu.memory_space<vmem>>, %arg3: memref<2x256xf32, #tpu.memory_space<vmem>>) attributes {dimension_semantics = [#tpu.dimension_semantics<parallel>, #tpu.dimension_semantics<parallel>], iteration_bounds = array<i64: 1, 1>, scalar_prefetch = 0 : i64, scratch_operands = 0 : i64, tpu.core_type = #tpu.core_type<tc>, window_params = [{transform_indices = @transform_0, window_bounds = array<i64: 2, 256>}, {transform_indices = @transform_1, window_bounds = array<i64: 2, 256>}]} {
    %c0 = arith.constant 0 : index
    %c0_0 = arith.constant 0 : index
    %0 = vector.load %arg2[%c0, %c0_0] : memref<2x256xf32, #tpu.memory_space<vmem>>, vector<2x256xf32>
    %c0_1 = arith.constant 0 : index
    %c0_2 = arith.constant 0 : index
    %1 = vector.load %arg3[%c0_1, %c0_2] : memref<2x256xf32, #tpu.memory_space<vmem>>, vector<2x256xf32>
    tpu.vector_store %arg3[%c0_1, %c0_2], %0 {strides = array<i32>} : memref<2x256xf32, #tpu.memory_space<vmem>>, vector<2x256xf32>,
    return
  }
  func.func @transform_0(%arg0: i32, %arg1: i32) -> (i32, i32) {
    %c0_i32 = arith.constant 0 : i32
    return %arg0, %arg1 : i32, i32
  }
  func.func @transform_1(%arg0: i32, %arg1: i32) -> (i32, i32) {
    %c0_i32 = arith.constant 0 : i32
    return %arg0, %arg1 : i32, i32
  }
}

</mosaic_0001>

<bundles_post_ra>
// kernel: tpu_custom_call.1
= control target key start
LH: loop header
LB: loop body
LE: loop exit
PB: predicated region body
PF: predicated region fallthrough
CT: control target
= control target key end

     0   :  { %6 = vsyncpa [#allocation3], 0  ;;  %s114_s0 = inlined_call_operand.hbm [shape: f32[2,256], index: 0, kind: input, shape index: {}]   ;;  %s115_s1 = inlined_call_operand.hbm [shape: f32[2,256], index: 1, kind: output, shape index: {}]  }
   0x1   :  { %7 = vsyncpa [#allocation4], 0  ;;  %s13_s8 = sshll.u32 %s114_s0, 4  ;;  %s96_s9 = smov [#allocation2]   ;;  %s14_s8 = int_to_ptr.hbm [resolvable:$true] %s13_s8 }
   0x2   :  { %s15_s10 = sshll.u32 %s96_s9, 4  ;;  %s16_s10 = int_to_ptr.vmem [resolvable:$true] %s15_s10 }
   0x3   :  { %18 = dma.hbm_to_vmem [thread:$0]  %s14_s8, 64, %s16_s10, [#allocation3]  }
   0x4   :  { %92 = dma.done.wait [#allocation3], 64  }
   0x5   :  { %93 = vsyncadd [#allocation3], 4294967232  ;;  %s97_s11 = smov [#allocation5]   ;;  %s32_s15 = sshll.u32 %s115_s1, 4  ;;  %v23_v0 = vld [vmem:[#allocation2] sm:$0xf]  ;;  %s33_s15 = int_to_ptr.hbm [resolvable:$true] %s32_s15 }
   0x6   :  { %s30_s12 = sshll.u32 %s97_s11, 4  ;;  %24 = vst [vmem:[#allocation5] sm:$0xf] %v23_v0  ;;  %s31_s12 = int_to_ptr.vmem [resolvable:$true] %s30_s12 }
   0x7   :  { %35 = dma.vmem_to_hbm [thread:$0]  %s31_s12, 64, %s33_s15, [#allocation4]  }
   0x8   :  { %94 = dma.done.wait [#allocation4], 64  }
   0x9   :  { %95 = vsyncadd [#allocation4], 4294967232 }
   0xa   :  { %40 = vsyncpa [#allocation3], 1 }
   0xb   :  { %41 = vsyncpa [#allocation4], 1 }

</bundles_post_ra>
